<compile_context>
chip_gen: v7x
topology: tpu7x:2x2x1
jax: 0.10.0
libtpu: 0.0.40
codegen_flags: <defaults>
</compile_context>

<pallas_src>
import jax
import jax.numpy as jnp
from jax import lax
from jax.experimental import pallas as pl
from jax.experimental.pallas import tpu as pltpu

EPS = 1e-5
NEG_SLOPE = 0.2
LANE = 128      # channels are zero-padded to a multiple of the lane width
PAD = 8         # sublane-aligned zero halo on both ends of L (conv padding room)


# ----------------------------- small helpers ------------------------------- #

def _round_up(x, m):
    return (x + m - 1) // m * m


def _pad_lane(v, cp):
    """Pad a 1-D per-channel vector with zeros to cp lanes -> (1, cp) f32."""
    v = jnp.asarray(v, jnp.float32)
    return jnp.pad(v, (0, cp - v.shape[0])).reshape(1, cp)


def _vmem_capacity_bytes():
    try:
        return int(pltpu.get_tpu_info().vmem_capacity_bytes)
    except Exception:
        return 64 * 1024 * 1024      # conservative default (v7x per-core VMEM)


def _pick_batch_tile(N, L, Cpi, Cpo, budget_bytes):
    """Largest batch tile that fits the VMEM budget, keeping >=2 grid steps
    when possible so both v7x TensorCores get work."""
    Lpad = L + 2 * PAD
    per_sample = 4 * (2 * Lpad * (Cpi + Cpo) + 7 * L * Cpo)   # rough live bytes
    tb = max(1, min(N, budget_bytes // max(per_sample, 1)))
    if N >= 2:
        tb = min(tb, N // 2)
    while N % tb:
        tb -= 1
    return tb


# ------------------------------ kernel bodies ------------------------------ #

def _leaky(h):
    return jnp.where(h >= 0, h, NEG_SLOPE * h)


def _masked_bn_act(h, s_ref, t_ref, L):
    """Folded BatchNorm (scale/shift) + LeakyReLU; the PAD halo rows are forced
    back to zero so the following 'same' conv sees zero padding (as PyTorch)."""
    a = _leaky(h * s_ref[...] + t_ref[...])
    row = lax.broadcasted_iota(jnp.int32, h.shape, 1)
    return jnp.where((row >= PAD) & (row < PAD + L), a, 0.0)


def _conv3(a, w_ref, b_ref, L):
    """'same' Conv1d(k=3) as three accumulating bf16 MXU matmuls over
    unit-stride shifted slices of the L-padded activation `a`."""
    TB, _, Ci = a.shape
    Co = w_ref.shape[-1]
    M = TB * L
    acc = jnp.zeros((M, Co), jnp.float32)
    for k in range(3):
        tap = a[:, PAD - 1 + k:PAD - 1 + k + L, :].reshape(M, Ci)
        acc = acc + jnp.dot(tap.astype(jnp.bfloat16), w_ref[k],
                            preferred_element_type=jnp.float32)
    return acc + b_ref[...]                       # (M, Co) float32


def _stage1_kernel(xp_ref, s1_ref, t1_ref, w1_ref, b1_ref, o_ref):
    """BN1 -> LeakyReLU -> Conv1d(k=3); output written with an L halo so that
    stage 2 can read its conv taps as plain shifted slices."""
    TB, Lpad, _ = xp_ref.shape
    L = Lpad - 2 * PAD
    Cpo = o_ref.shape[-1]

    a = _masked_bn_act(xp_ref[...], s1_ref, t1_ref, L)
    h1 = _conv3(a, w1_ref, b1_ref, L).reshape(TB, L, Cpo)

    o_ref[:, 0:PAD, :] = jnp.zeros((TB, PAD, Cpo), jnp.float32)
    o_ref[:, PAD + L:Lpad, :] = jnp.zeros((TB, PAD, Cpo), jnp.float32)
    o_ref[:, PAD:PAD + L, :] = h1


def _make_stage2_kernel(has_resample):
    """BN2 -> LeakyReLU -> Conv1d(k=3) + skip, MaxPool1d(3), FMS gate."""

    def kernel(xp_ref, h1p_ref, s2_ref, t2_ref, w2_ref, b2_ref, *rest):
        if has_resample:
            wr_ref, br_ref, wl_ref, bl_ref, o_ref = rest
        else:
            wl_ref, bl_ref, o_ref = rest

        TB, Lpad, Cpo = h1p_ref.shape
        Cpi = xp_ref.shape[-1]
        L = Lpad - 2 * PAD
        Lp = o_ref.shape[1]
        M = TB * L

        a = _masked_bn_act(h1p_ref[...], s2_ref, t2_ref, L)
        h2 = _conv3(a, w2_ref, b2_ref, L)                       # (M, Cpo)

        # skip path: 1x1 conv (bf16 MXU) or identity (Python-time branch)
        x = xp_ref[:, PAD:PAD + L, :]                           # (TB, L, Cpi)
        if has_resample:
            skip = jnp.dot(x.reshape(M, Cpi).astype(jnp.bfloat16), wr_ref[...],
                           preferred_element_type=jnp.float32) + br_ref[...]
        else:
            skip = x.reshape(M, Cpo)                            # Cpi == Cpo here
        res = (h2 + skip).reshape(TB, L, Cpo)

        # MaxPool1d(kernel_size=3): stride 3, no padding, floor
        r = res[:, :3 * Lp, :].reshape(TB * Lp, 3, Cpo)
        pooled = jnp.max(r, axis=1).reshape(TB, Lp, Cpo)

        # FMS gate: AdaptiveAvgPool1d(1) -> Linear -> sigmoid (per sample)
        t0 = jnp.mean(pooled, axis=1)                           # (TB, Cpo)
        z = jnp.dot(t0.astype(jnp.bfloat16), wl_ref[...],
                    preferred_element_type=jnp.float32) + bl_ref[...]
        t = jax.nn.sigmoid(z).reshape(TB, 1, Cpo)

        o_ref[...] = pooled * t + t                             # single store

    return kernel


# --------------------------------- wrapper --------------------------------- #

def res_block_forward_nlc(x_nlc, params, in_channels, out_channels):
    """x_nlc: (N, L, Cin) float32, channels-last.  Returns (N, L_pool, Cout)."""
    N, L, Cin = x_nlc.shape
    assert Cin == in_channels
    Cout = out_channels
    Lp = (L - 3) // 3 + 1                                       # MaxPool1d(3)
    Lpad = L + 2 * PAD
    Cpi = _round_up(Cin, LANE)
    Cpo = _round_up(Cout, LANE)
    has_resample = in_channels != out_channels

    vmem_limit = min(int(_vmem_capacity_bytes() * 0.85), 100 * 1024 * 1024)
    tb = _pick_batch_tile(N, L, Cpi, Cpo, vmem_limit // 2)
    grid = (N // tb,)

    x_nlc = x_nlc.astype(jnp.float32)

    # --- BatchNorm1d batch stats hoisted out of the kernel (training mode,
    #     biased variance), folded into per-channel scale/shift ---
    mean1 = jnp.mean(x_nlc, axis=(0, 1))
    var1 = jnp.var(x_nlc, axis=(0, 1))
    scale1 = params["bn1_gamma"] * lax.rsqrt(var1 + EPS)
    shift1 = params["bn1_beta"] - mean1 * scale1
    s1 = _pad_lane(scale1, Cpi)
    t1 = _pad_lane(shift1, Cpi)

    # channels padded to lane width, sublane-aligned zero halo along L
    xp = jnp.pad(x_nlc, ((0, 0), (PAD, PAD), (0, Cpi - Cin)))

    # conv1 weights: (Cout, Cin, 3) -> (3, Cin, Cout), lane-padded, bf16
    w1 = jnp.transpose(params["conv1_w"], (2, 1, 0))
    w1 = jnp.pad(w1, ((0, 0), (0, Cpi - Cin), (0, Cpo - Cout))).astype(jnp.bfloat16)
    b1 = _pad_lane(params["conv1_b"], Cpo)

    bspec_x = pl.BlockSpec((tb, Lpad, Cpi), lambda b: (b, 0, 0))
    bspec_h = pl.BlockSpec((tb, Lpad, Cpo), lambda b: (b, 0, 0))
    bvec_i = pl.BlockSpec((1, Cpi), lambda b: (0, 0))
    bvec_o = pl.BlockSpec((1, Cpo), lambda b: (0, 0))
    bw3_i = pl.BlockSpec((3, Cpi, Cpo), lambda b: (0, 0, 0))
    bw3_o = pl.BlockSpec((3, Cpo, Cpo), lambda b: (0, 0, 0))
    bmat_i = pl.BlockSpec((Cpi, Cpo), lambda b: (0, 0))
    bmat_o = pl.BlockSpec((Cpo, Cpo), lambda b: (0, 0))
    bspec_out = pl.BlockSpec((tb, Lp, Cpo), lambda b: (b, 0, 0))

    cparams = pltpu.CompilerParams(dimension_semantics=("parallel",),
                                   vmem_limit_bytes=vmem_limit)

    cost1 = pl.CostEstimate(
        flops=2 * N * L * 3 * Cpi * Cpo,
        transcendentals=0,
        bytes_accessed=4 * N * Lpad * (Cpi + Cpo) + 2 * 3 * Cpi * Cpo)

    # ---- stage 1: BN1 -> LeakyReLU -> Conv1d(k=3)  (h1 written L-padded) ----
    h1p = pl.pallas_call(
        _stage1_kernel,
        grid=grid,
        in_specs=[bspec_x, bvec_i, bvec_i, bw3_i, bvec_o],
        out_specs=bspec_h,
        out_shape=jax.ShapeDtypeStruct((N, Lpad, Cpo), jnp.float32),
        compiler_params=cparams,
        cost_estimate=cost1,
    )(xp, s1, t1, w1, b1)

    # --- BN2 batch stats from h1 (two-pass, wrapper side) ---
    h1 = h1p[:, PAD:PAD + L, :]
    mean2 = jnp.mean(h1, axis=(0, 1))
    var2 = jnp.var(h1, axis=(0, 1))
    g2 = jnp.pad(params["bn2_gamma"].astype(jnp.float32), (0, Cpo - Cout))
    be2 = jnp.pad(params["bn2_beta"].astype(jnp.float32), (0, Cpo - Cout))
    scale2 = g2 * lax.rsqrt(var2 + EPS)
    shift2 = be2 - mean2 * scale2
    s2 = scale2.reshape(1, Cpo)
    t2 = shift2.reshape(1, Cpo)

    w2 = jnp.transpose(params["conv2_w"], (2, 1, 0))
    w2 = jnp.pad(w2, ((0, 0), (0, Cpo - Cout), (0, Cpo - Cout))).astype(jnp.bfloat16)
    b2 = _pad_lane(params["conv2_b"], Cpo)
    wl = jnp.pad(jnp.transpose(params["lin_w"]),
                 ((0, Cpo - Cout), (0, Cpo - Cout))).astype(jnp.bfloat16)
    bl = _pad_lane(params["lin_b"], Cpo)

    args = [xp, h1p, s2, t2, w2, b2]
    in_specs = [bspec_x, bspec_h, bvec_o, bvec_o, bw3_o, bvec_o]
    if has_resample:
        wr = jnp.pad(jnp.transpose(params["res_w"][:, :, 0]),
                     ((0, Cpi - Cin), (0, Cpo - Cout))).astype(jnp.bfloat16)
        br = _pad_lane(params["res_b"], Cpo)
        args += [wr, br]
        in_specs += [bmat_i, bvec_o]
    args += [wl, bl]
    in_specs += [bmat_o, bvec_o]

    cost2 = pl.CostEstimate(
        flops=(2 * N * L * 3 * Cpo * Cpo
               + (2 * N * L * Cpi * Cpo if has_resample else 0)
               + 2 * N * Cpo * Cpo),
        transcendentals=N * Cpo,
        bytes_accessed=(4 * N * Lpad * (Cpi + Cpo) + 4 * N * Lp * Cpo
                        + 2 * (3 * Cpo + Cpi + Cpo) * Cpo))

    # ---- stage 2: BN2 -> LReLU -> Conv2 + skip -> MaxPool(3) -> FMS gate ----
    out_p = pl.pallas_call(
        _make_stage2_kernel(has_resample),
        grid=grid,
        in_specs=in_specs,
        out_specs=bspec_out,
        out_shape=jax.ShapeDtypeStruct((N, Lp, Cpo), jnp.float32),
        compiler_params=cparams,
        cost_estimate=cost2,
    )(*args)

    return out_p[:, :, :Cout]                                   # crop lane padding


def res_block_forward(x_ncl, params, in_channels, out_channels):
    """PyTorch-compatible NCL wrapper: (N, Cin, L) -> (N, Cout, L_pool).
    Real models should call res_block_forward_nlc and stay channels-last so the
    two HBM transpose passes below disappear."""
    x_nlc = jnp.transpose(x_ncl, (0, 2, 1))
    out_nlc = res_block_forward_nlc(x_nlc, params, in_channels, out_channels)
    return jnp.transpose(out_nlc, (0, 2, 1))


# ----------------------------- params & reference -------------------------- #

def init_params(key, in_channels, out_channels):
    ks = jax.random.split(key, 12)

    def u(k, shape, scale):
        return jax.random.uniform(k, shape, jnp.float32, -scale, scale)

    p = {
        "bn1_gamma": 1.0 + u(ks[0], (in_channels,), 0.1),
        "bn1_beta": u(ks[1], (in_channels,), 0.1),
        "conv1_w": u(ks[2], (out_channels, in_channels, 3), 0.3),
        "conv1_b": u(ks[3], (out_channels,), 0.3),
        "bn2_gamma": 1.0 + u(ks[4], (out_channels,), 0.1),
        "bn2_beta": u(ks[5], (out_channels,), 0.1),
        "conv2_w": u(ks[6], (out_channels, out_channels, 3), 0.3),
        "conv2_b": u(ks[7], (out_channels,), 0.3),
        "lin_w": u(ks[8], (out_channels, out_channels), 0.3),
        "lin_b": u(ks[9], (out_channels,), 0.3),
    }
    if in_channels != out_channels:
        p["res_w"] = u(ks[10], (out_channels, in_channels, 1), 0.3)
        p["res_b"] = u(ks[11], (out_channels,), 0.3)
    return p


def res_block_reference(x, params, in_channels, out_channels):
    """Pure-JAX f32 reference of the PyTorch forward (NCL layout)."""
    def bn(h, g, b):
        mean = h.mean(axis=(0, 2), keepdims=True)
        var = ((h - mean) ** 2).mean(axis=(0, 2), keepdims=True)
        return (h - mean) / jnp.sqrt(var + EPS) * g[None, :, None] + b[None, :, None]

    def lrelu(h):
        return jnp.where(h >= 0, h, NEG_SLOPE * h)

    def conv3(h, w, b):
        L = h.shape[2]
        hp = jnp.pad(h, ((0, 0), (0, 0), (1, 1)))
        out = sum(jnp.einsum("ncl,oc->nol", hp[:, :, k:k + L], w[:, :, k],
                             preferred_element_type=jnp.float32)
                  for k in range(3))
        return out + b[None, :, None]

    h = lrelu(bn(x, params["bn1_gamma"], params["bn1_beta"]))
    h = conv3(h, params["conv1_w"], params["conv1_b"])
    h = lrelu(bn(h, params["bn2_gamma"], params["bn2_beta"]))
    h = conv3(h, params["conv2_w"], params["conv2_b"])

    if in_channels != out_channels:
        skip = jnp.einsum("ncl,oc->nol", x, params["res_w"][:, :, 0],
                          preferred_element_type=jnp.float32) \
            + params["res_b"][None, :, None]
    else:
        skip = x
    res = h + skip

    N, Co, L = res.shape
    Lp = (L - 3) // 3 + 1
    res = res[:, :, :Lp * 3].reshape(N, Co, Lp, 3).max(axis=-1)

    t0 = res.mean(axis=-1)                                       # (N, Co)
    t = jax.nn.sigmoid(t0 @ params["lin_w"].T + params["lin_b"])
    t = t[:, :, None]
    return res * t + t


if __name__ == "__main__":
    key = jax.random.PRNGKey(0)
    N, L = 2, 24

    for (Cin, Cout) in [(4, 8), (8, 8)]:        # resample path and identity path
        kx, kp, key = jax.random.split(key, 3)
        x = jax.random.normal(kx, (N, Cin, L), jnp.float32)
        params = init_params(kp, Cin, Cout)

        out = jax.block_until_ready(res_block_forward(x, params, Cin, Cout))
        ref = res_block_reference(x, params, Cin, Cout)

        assert out.shape == (N, Cout, L // 3), out.shape
        # bf16 MXU operands (f32 accumulation) set the accuracy floor here.
        assert bool(jnp.allclose(out, ref, rtol=3e-2, atol=3e-2)), \
            (Cin, Cout, float(jnp.max(jnp.abs(out - ref))))

    print("KERNEL_OK")
</pallas_src>

<mosaic_0001>
module attributes {stable_mosaic.version = 11 : i64} {
  func.func @_stage1_kernel(%arg0: i32, %arg1: memref<1x40x128xf32, #tpu.memory_space<vmem>>, %arg2: memref<1x128xf32, #tpu.memory_space<vmem>>, %arg3: memref<1x128xf32, #tpu.memory_space<vmem>>, %arg4: memref<3x128x128xbf16, #tpu.memory_space<vmem>>, %arg5: memref<1x128xf32, #tpu.memory_space<vmem>>, %arg6: memref<1x40x128xf32, #tpu.memory_space<vmem>>) attributes {dimension_semantics = [#tpu.dimension_semantics<parallel>], iteration_bounds = array<i64: 2>, scalar_prefetch = 0 : i64, scratch_operands = 0 : i64, tpu.core_type = #tpu.core_type<tc>, window_params = [{transform_indices = @transform_0, window_bounds = array<i64: 1, 40, 128>}, {pipeline_mode = #tpu.pipeline_mode<synchronous>, transform_indices = @transform_1, window_bounds = array<i64: 1, 128>}, {pipeline_mode = #tpu.pipeline_mode<synchronous>, transform_indices = @transform_2, window_bounds = array<i64: 1, 128>}, {pipeline_mode = #tpu.pipeline_mode<synchronous>, transform_indices = @transform_3, window_bounds = array<i64: 3, 128, 128>}, {pipeline_mode = #tpu.pipeline_mode<synchronous>, transform_indices = @transform_4, window_bounds = array<i64: 1, 128>}, {transform_indices = @transform_5, window_bounds = array<i64: 1, 40, 128>}]} {
    %c0 = arith.constant 0 : index
    %c0_0 = arith.constant 0 : index
    %c0_1 = arith.constant 0 : index
    %0 = vector.load %arg1[%c0, %c0_0, %c0_1] : memref<1x40x128xf32, #tpu.memory_space<vmem>>, vector<1x40x128xf32>
    %c0_2 = arith.constant 0 : index
    %c0_3 = arith.constant 0 : index
    %1 = vector.load %arg2[%c0_2, %c0_3] : memref<1x128xf32, #tpu.memory_space<vmem>>, vector<1x128xf32>
    %2 = vector.shape_cast %1 : vector<1x128xf32> to vector<1x1x128xf32>
    %3 = vector.broadcast %2 : vector<1x1x128xf32> to vector<1x40x128xf32>
    %4 = arith.mulf %0, %3 : vector<1x40x128xf32>
    %c0_4 = arith.constant 0 : index
    %c0_5 = arith.constant 0 : index
    %5 = vector.load %arg3[%c0_4, %c0_5] : memref<1x128xf32, #tpu.memory_space<vmem>>, vector<1x128xf32>
    %6 = vector.shape_cast %5 : vector<1x128xf32> to vector<1x1x128xf32>
    %7 = vector.broadcast %6 : vector<1x1x128xf32> to vector<1x40x128xf32>
    %8 = arith.addf %4, %7 : vector<1x40x128xf32>
    %cst = arith.constant 0.000000e+00 : f32
    %9 = vector.broadcast %cst : f32 to vector<1x40x128xf32>
    %10 = arith.cmpf oge, %8, %9 : vector<1x40x128xf32>
    %cst_6 = arith.constant 2.000000e-01 : f32
    %11 = vector.broadcast %cst_6 : f32 to vector<1x40x128xf32>
    %12 = arith.mulf %11, %8 : vector<1x40x128xf32>
    %13 = arith.select %10, %8, %12 : vector<1x40x128xi1>, vector<1x40x128xf32>
    %14 = tpu.iota {dimensions = array<i32: 1>} : vector<1x40x128xi32>
    %c8_i32 = arith.constant 8 : i32
    %15 = vector.broadcast %c8_i32 : i32 to vector<1x40x128xi32>
    %16 = arith.cmpi sge, %14, %15 : vector<1x40x128xi32>
    %c32_i32 = arith.constant 32 : i32
    %17 = vector.broadcast %c32_i32 : i32 to vector<1x40x128xi32>
    %18 = arith.cmpi slt, %14, %17 : vector<1x40x128xi32>
    %19 = arith.andi %16, %18 : vector<1x40x128xi1>
    %cst_7 = arith.constant 0.000000e+00 : f32
    %20 = vector.broadcast %cst_7 : f32 to vector<1x40x128xf32>
    %21 = arith.select %19, %13, %20 : vector<1x40x128xi1>, vector<1x40x128xf32>
    %cst_8 = arith.constant 0.000000e+00 : f32
    %22 = vector.broadcast %cst_8 : f32 to vector<24x128xf32>
    %23 = vector.extract_strided_slice %21 {offsets = [0, 7, 0], sizes = [1, 24, 128], strides = [1, 1, 1]} : vector<1x40x128xf32> to vector<1x24x128xf32>
    %24 = vector.shape_cast %23 : vector<1x24x128xf32> to vector<24x128xf32>
    %25 = arith.truncf %24 : vector<24x128xf32> to vector<24x128xbf16>
    %c0_9 = arith.constant 0 : index
    %c0_10 = arith.constant 0 : index
    %c0_11 = arith.constant 0 : index
    %26 = vector.load %arg4[%c0_9, %c0_10, %c0_11] : memref<3x128x128xbf16, #tpu.memory_space<vmem>>, vector<1x128x128xbf16>
    %27 = vector.shape_cast %26 : vector<1x128x128xbf16> to vector<128x128xbf16>
    %cst_12 = arith.constant dense<0.000000e+00> : vector<24x128xf32>
    %28 = tpu.matmul %25, %27, %cst_12 {dimension_numbers = #tpu.dot_dimension_numbers<[1], [0], [0], [1], [0, 0, 1, 1], [], []>} : vector<24x128xbf16>, vector<128x128xbf16>, vector<24x128xf32> -> vector<24x128xf32>
    %29 = arith.addf %22, %28 : vector<24x128xf32>
    %30 = vector.extract_strided_slice %21 {offsets = [0, 8, 0], sizes = [1, 24, 128], strides = [1, 1, 1]} : vector<1x40x128xf32> to vector<1x24x128xf32>
    %31 = vector.shape_cast %30 : vector<1x24x128xf32> to vector<24x128xf32>
    %32 = arith.truncf %31 : vector<24x128xf32> to vector<24x128xbf16>
    %c1 = arith.constant 1 : index
    %c0_13 = arith.constant 0 : index
    %c0_14 = arith.constant 0 : index
    %33 = vector.load %arg4[%c1, %c0_13, %c0_14] : memref<3x128x128xbf16, #tpu.memory_space<vmem>>, vector<1x128x128xbf16>
    %34 = vector.shape_cast %33 : vector<1x128x128xbf16> to vector<128x128xbf16>
    %cst_15 = arith.constant dense<0.000000e+00> : vector<24x128xf32>
    %35 = tpu.matmul %32, %34, %cst_15 {dimension_numbers = #tpu.dot_dimension_numbers<[1], [0], [0], [1], [0, 0, 1, 1], [], []>} : vector<24x128xbf16>, vector<128x128xbf16>, vector<24x128xf32> -> vector<24x128xf32>
    %36 = arith.addf %29, %35 : vector<24x128xf32>
    %37 = vector.extract_strided_slice %21 {offsets = [0, 9, 0], sizes = [1, 24, 128], strides = [1, 1, 1]} : vector<1x40x128xf32> to vector<1x24x128xf32>
    %38 = vector.shape_cast %37 : vector<1x24x128xf32> to vector<24x128xf32>
    %39 = arith.truncf %38 : vector<24x128xf32> to vector<24x128xbf16>
    %c2 = arith.constant 2 : index
    %c0_16 = arith.constant 0 : index
    %c0_17 = arith.constant 0 : index
    %40 = vector.load %arg4[%c2, %c0_16, %c0_17] : memref<3x128x128xbf16, #tpu.memory_space<vmem>>, vector<1x128x128xbf16>
    %41 = vector.shape_cast %40 : vector<1x128x128xbf16> to vector<128x128xbf16>
    %cst_18 = arith.constant dense<0.000000e+00> : vector<24x128xf32>
    %42 = tpu.matmul %39, %41, %cst_18 {dimension_numbers = #tpu.dot_dimension_numbers<[1], [0], [0], [1], [0, 0, 1, 1], [], []>} : vector<24x128xbf16>, vector<128x128xbf16>, vector<24x128xf32> -> vector<24x128xf32>
    %43 = arith.addf %36, %42 : vector<24x128xf32>
    %c0_19 = arith.constant 0 : index
    %c0_20 = arith.constant 0 : index
    %44 = vector.load %arg5[%c0_19, %c0_20] : memref<1x128xf32, #tpu.memory_space<vmem>>, vector<1x128xf32>
    %45 = vector.broadcast %44 : vector<1x128xf32> to vector<24x128xf32>
    %46 = arith.addf %43, %45 : vector<24x128xf32>
    %47 = vector.shape_cast %46 : vector<24x128xf32> to vector<1x24x128xf32>
    %cst_21 = arith.constant 0.000000e+00 : f32
    %48 = vector.broadcast %cst_21 : f32 to vector<1x8x128xf32>
    %c0_22 = arith.constant 0 : index
    %c0_23 = arith.constant 0 : index
    %c0_24 = arith.constant 0 : index
    %49 = vector.load %arg6[%c0_22, %c0_23, %c0_24] : memref<1x40x128xf32, #tpu.memory_space<vmem>>, vector<1x8x128xf32>
    tpu.vector_store %arg6[%c0_22, %c0_23, %c0_24], %48 {strides = array<i32>} : memref<1x40x128xf32, #tpu.memory_space<vmem>>, vector<1x8x128xf32>,
    %cst_25 = arith.constant 0.000000e+00 : f32
    %50 = vector.broadcast %cst_25 : f32 to vector<1x8x128xf32>
    %c0_26 = arith.constant 0 : index
    %c32 = arith.constant 32 : index
    %c0_27 = arith.constant 0 : index
    %51 = vector.load %arg6[%c0_26, %c32, %c0_27] : memref<1x40x128xf32, #tpu.memory_space<vmem>>, vector<1x8x128xf32>
    tpu.vector_store %arg6[%c0_26, %c32, %c0_27], %50 {strides = array<i32>} : memref<1x40x128xf32, #tpu.memory_space<vmem>>, vector<1x8x128xf32>,
    %c0_28 = arith.constant 0 : index
    %c8 = arith.constant 8 : index
    %c0_29 = arith.constant 0 : index
    %52 = vector.load %arg6[%c0_28, %c8, %c0_29] : memref<1x40x128xf32, #tpu.memory_space<vmem>>, vector<1x24x128xf32>
    tpu.vector_store %arg6[%c0_28, %c8, %c0_29], %47 {strides = array<i32>} : memref<1x40x128xf32, #tpu.memory_space<vmem>>, vector<1x24x128xf32>,
    return
  }
  func.func @transform_0(%arg0: i32) -> (i32, i32, i32) {
    %c0_i32 = arith.constant 0 : i32
    %c0_i32_0 = arith.constant 0 : i32
    %c0_i32_1 = arith.constant 0 : i32
    return %arg0, %c0_i32, %c0_i32_0 : i32, i32, i32
  }
  func.func @transform_1(%arg0: i32) -> (i32, i32) {
    %c0_i32 = arith.constant 0 : i32
    %c0_i32_0 = arith.constant 0 : i32
    %c0_i32_1 = arith.constant 0 : i32
    return %c0_i32, %c0_i32_0 : i32, i32
  }
  func.func @transform_2(%arg0: i32) -> (i32, i32) {
    %c0_i32 = arith.constant 0 : i32
    %c0_i32_0 = arith.constant 0 : i32
    %c0_i32_1 = arith.constant 0 : i32
    return %c0_i32, %c0_i32_0 : i32, i32
  }
  func.func @transform_3(%arg0: i32) -> (i32, i32, i32) {
    %c0_i32 = arith.constant 0 : i32
    %c0_i32_0 = arith.constant 0 : i32
    %c0_i32_1 = arith.constant 0 : i32
    %c0_i32_2 = arith.constant 0 : i32
    return %c0_i32, %c0_i32_0, %c0_i32_1 : i32, i32, i32
  }
  func.func @transform_4(%arg0: i32) -> (i32, i32) {
    %c0_i32 = arith.constant 0 : i32
    %c0_i32_0 = arith.constant 0 : i32
    %c0_i32_1 = arith.constant 0 : i32
    return %c0_i32, %c0_i32_0 : i32, i32
  }
  func.func @transform_5(%arg0: i32) -> (i32, i32, i32) {
    %c0_i32 = arith.constant 0 : i32
    %c0_i32_0 = arith.constant 0 : i32
    %c0_i32_1 = arith.constant 0 : i32
    return %arg0, %c0_i32, %c0_i32_0 : i32, i32, i32
  }
}

</mosaic_0001>

<bundles_post_ra>
// kernel: tpu_custom_call.1
= control target key start
LH: loop header
LB: loop body
LE: loop exit
PB: predicated region body
PF: predicated region fallthrough
CT: control target
= control target key end

     0   :  { %10 = vsyncpa [#allocation3], 0  ;;  %s1441_s0 = inlined_call_operand.hbm [shape: f32[2,40,128], index: 0, kind: input, shape index: {}]   ;;  %s1442_s1 = inlined_call_operand.vmem [shape: f32[1,128], index: 1, kind: input, shape index: {}]   ;;  %s1443_s2 = inlined_call_operand.vmem [shape: f32[1,128], index: 2, kind: input, shape index: {}]   ;;  %s1444_s3 = inlined_call_operand.hbm [shape: bf16[3,128,128], index: 3, kind: input, shape index: {}]   ;;  %s1445_s4 = inlined_call_operand.vmem [shape: f32[1,128], index: 4, kind: input, shape index: {}]   ;;  %s1446_s5 = inlined_call_operand.hbm [shape: f32[2,40,128], index: 5, kind: output, shape index: {}]  }
   0x1   :  { %12 = vsyncpa [#allocation3 + $0x1], 0 }
   0x2   :  { %13 = vsyncpa [#allocation6], 0 }
   0x3   :  { %14 = vsyncpa [#allocation4], 0 }
   0x4   :  { %16 = vsyncpa [#allocation4 + $0x1], 0  ;;  %s1214_s18 = smov 0   ;;  %s1216_s19 = smov 0  }
   0x5   :  { %s1218_s20 = smov 0   ;;  %s1220_s21 = smov 0  }
   0x6 LB: > { %s1235_s22 = sadd.s32 4294967295, %s1172_s21   ;;  %s825_s23 = sadd.s32 4294967294, %s1172_s21   ;;  %s1172_s21 = sphi %s1220_s21, %s1466_s21   ;;  %s1168_s20 = sphi %s1218_s20, %s1465_s20   ;;  %s1164_s19 = sphi %s1216_s19, %s1464_s19   ;;  %s1160_s18 = sphi %s1214_s18, %s1463_s18  }
   0x7   : > { %p42_p0 = scmp.ne.s32.totalorder %s1164_s19, %s1160_s18  ;;  %p1447_p1 = scmp.eq.s32.totalorder %s1235_s22, 0 }
   0x8   : > { %p156_p3 = scmp.eq.s32.totalorder %s825_s23, 1  ;;  %p826_p5 = scmp.ge.s32.totalorder %s1172_s21, 1 }
   0x9   : > { %p1244_p4 = por %p1447_p1, %p42_p0  ;;  %p163_p7 = scmp.lt.s32.totalorder %s1172_s21, 3 }
   0xa   : > { %p1249_p6 = por %p156_p3, %p42_p0  ;;  %s1174_s27 = smov [#allocation5]  }
   0xb   : > { %s1450_s24 = scalar_select %p1244_p4, 1, 0 }
   0xc   : > { %s1451_s25 = scalar_select %p1249_p6, 1, 0 }
   0xd   : > { %p1254_p8 = pnand %p826_p5, %p163_p7  ;;  %s181_s28 = sshll.u32 %s1174_s27, 4  ;;  %s1258_s28 = int_to_ptr.vmem [resolvable:$true] %s181_s28 }
   0xe   : > { %s1270_s30 = sadd.s32 1, %s1172_s21   ;;  %s29_s6 = sadd.s32 1, %s1168_s20 }
   0xf   : > { %s1452_s26 = scalar_select %p1254_p8, 1, 0 }
  0x10   : > { %p964_p9 = pneg %p1254_p8  ;;  %s26_s7 = ssub.s32 %s1172_s21, %s1270_s30 }
  0x11   : > { %s1044_s10 = scalar_lea.hbm %s1444_s3, 3072 }
  0x12   : > { %p1265_p11 = pnand %p964_p9, %p1447_p1  ;;  %p1045_p12 = scmp.ne.s32.totalorder %s1444_s3, %s1044_s10 }
  0x13   : > { %p1051_p5 = scmp.lt.u32.totalorder %s1044_s10, %s1444_s3 }
  0x14   : > { %p1046_p13 = pneg %p1265_p11 }
  0x16   : > { %p1047_p0 = pnand %p1046_p13, %p1045_p12 }
  0x18   : > { %p1048_p3 = pneg %p1047_p0 }
  0x1a   : > { %p1053_p7 = pnand %p1051_p5, %p1048_p3 }
  0x1c   : > { %1056 = shalt.err (!%p1053_p7)
}
  0x1d   : > { %s1057_s15 = scalar_lea.vmem %s1258_s28, 3072  ;;  %p1065_p2 = scmp.lt.s32.totalorder %s1258_s28, %s1258_s28 }
  0x1e   : > { %p1058_p9 = scmp.ne.s32.totalorder %s1258_s28, %s1057_s15  ;;  %p1066_p6 = scmp.lt.s32.totalorder %s1057_s15, %s1057_s15 }
  0x20   : > { %p1060_p10 = pnand %p1058_p9, %p1046_p13  ;;  %p1067_p4 = por %p1066_p6, %p1065_p2 }
  0x22   : > { %p1061_p1 = pneg %p1060_p10 }
  0x24   : > { %p1068_p8 = pnand %p1067_p4, %p1061_p1 }
  0x26   : > { %1071 = shalt.err (!%p1068_p8)
}
  0x27   : > { %s1175_s16 = smov 64   ;;  %s1176_s17 = smov 4  }
  0x28   : > { %967 = dma.hbm_to_vmem [thread:$0]  (!%p1265_p11), %s1444_s3, 3072, %s1258_s28, [#allocation6], %s1175_s16, %s1175_s16, %s1176_s17  }
  0x29   : > { %p27_p2 = scmp.eq.s32.totalorder %s26_s7, 0  ;;  %p36_p1 = scmp.ne.s32.totalorder %s1168_s20, %s1164_s19 }
  0x2a   : > { %p37_p4 = scmp.eq.s32.totalorder %s1172_s21, 0  ;;  %p977_p6 = scmp.lt.s32.totalorder %s1172_s21, 2 }
  0x2b   : > { %s1301_s8 = scalar_select %p27_p2, %s1168_s20, %s29_s6  }
  0x2c   : > { %p38_p8 = por %p37_p4, %p36_p1  ;;  %p1454_p10 = scmp.eq.s32.totalorder %s1235_s22, 1 }
  0x2d   : > { %s198_s10 = sand.u32 1, %s1168_s20   ;;  %s953_s11 = smul.u32 640, %s1172_s21 }
  0x2e   : > { %p1305_p12 = por %p1454_p10, %p36_p1  ;;  %s952_s12 = smul.u32 40, %s198_s10 }
  0x2f   : > { %s1314_s14 = scalar_lea.hbm %s1441_s0, %s953_s11  ;;  %p1316_p11 = pnand %p977_p6, %p38_p8 }
  0x30   : > { %s202_s6 = scalar_lea.vmem [#allocation2], %s952_s12  ;;  %s1322_s15 = scalar_lea.sflag [#allocation3], %s198_s10 }
  0x31   : > { %s209_s7 = sshll.u32 %s202_s6, 4  ;;  %s1072_s16 = scalar_lea.hbm %s1314_s14, 640  ;;  %s1320_s7 = int_to_ptr.vmem [resolvable:$true] %s209_s7 }
  0x32   : > { %p1073_p13 = scmp.ne.s32.totalorder %s1314_s14, %s1072_s16  ;;  %p1074_p0 = pneg %p1316_p11 }
  0x33   : > { %s1077_s27 = scalar_lea.hbm %s1441_s0, 1280  ;;  %p1078_p7 = scmp.lt.u32.totalorder %s1314_s14, %s1441_s0 }
  0x34   : > { %p1075_p3 = pnand %p1074_p0, %p1073_p13  ;;  %p1079_p9 = scmp.lt.u32.totalorder %s1077_s27, %s1072_s16 }
  0x35   : > { %p1081_p1 = scmp.lt.u32.totalorder %s1072_s16, %s1314_s14 }
  0x36   : > { %p1076_p5 = pneg %p1075_p3  ;;  %p1080_p2 = por %p1079_p9, %p1078_p7 }
  0x38   : > { %p1082_p4 = por %p1081_p1, %p1080_p2 }
  0x3a   : > { %p1083_p6 = pnand %p1082_p4, %p1076_p5 }
  0x3c   : > { %1086 = shalt.err (!%p1083_p6)
}
  0x3d   : > { %s1087_s10 = scalar_lea.vmem %s1320_s7, 640  ;;  %s1177_s12 = smov [#allocation2]  }
  0x3e   : > { %p1088_p8 = scmp.ne.s32.totalorder %s1320_s7, %s1087_s10  ;;  %s1092_s13 = sshll.u32 %s1177_s12, 4  ;;  %s1093_s13 = int_to_ptr.vmem [resolvable:$false] %s1092_s13 }
  0x3f   : > { %s1094_s6 = scalar_lea.vmem %s1093_s13, 1280  ;;  %p1095_p3 = scmp.lt.s32.totalorder %s1320_s7, %s1093_s13 }
  0x40   : > { %p1090_p10 = pnand %p1088_p8, %p1074_p0  ;;  %p1096_p7 = scmp.lt.s32.totalorder %s1094_s6, %s1087_s10 }
  0x42   : > { %p1091_p13 = pneg %p1090_p10  ;;  %p1097_p9 = por %p1096_p7, %p1095_p3 }
  0x44   : > { %p1098_p2 = pnand %p1097_p9, %p1091_p13 }
  0x46   : > { %1101 = shalt.err (!%p1098_p2)
}
  0x47   : > { %s1178_s16 = smov 128   ;;  %s1179_s17 = smov 8  }
  0x48   : > { %971 = dma.hbm_to_vmem [thread:$0]  (!%p1316_p11), %s1314_s14, 640, %s1320_s7, %s1322_s15, %s1178_s16, %s1178_s16, %s1179_s17  }
  0x49   : > { %p1457_p0 = scmp.ne.s32.totalorder %s1452_s26, 0 }
  0x4a   : > { %s1353_s23 = sand.u32 (!%p1457_p0), 1, %s1164_s19   ;;  %p1458_p5 = scmp.ne.s32.totalorder (!%p1457_p0), %s1450_s24, 0 }
  0x4b   : > { %221 = sbr.rel (%p1457_p0) target bundleno = 385 (0x181), region = 40  ;;  %s224_s11 = scalar_lea.sflag (!%p1457_p0), [#allocation3], %s1353_s23 }
  0x4c   : > { %s954_s27 = smul.u32 (!%p1457_p0), 40, %s1353_s23 }
  0x4e   : > { %s1357_s29 = scalar_lea.vmem (!%p1457_p0), [#allocation2], %s954_s27 }
  0x52   : > { %1147 = dma.done.wait (%p1458_p5), %s224_s11, 640  }
  0x53   : > { %1149 = vsyncadd (%p1458_p5), %s224_s11, 4294966656  ;;  %p1459_p11 = scmp.eq.s32.totalorder %s1235_s22, 0 }
  0x55   : > { %1151 = dma.done.wait (%p1459_p11), [#allocation6], 3072   ;;  %p1460_p1 = pmov %p1459_p11 }
  0x56   : > { %s1367_s26 = scalar_lea.vmem [#allocation7], %s954_s27  ;;  %v1180_v0 = vmov 0.0   ;;  %v1020_v1 = vld [vmem:[#allocation5 + $0x40] sm:$0xff]   ;;  %v1022_v3 = vld [vmem:[#allocation5 + $0x48] sm:$0xff]   ;;  %v1024_v5 = vld [vmem:[#allocation5 + $0x50] sm:$0xff]   ;;  %s955_s12 = smul.u32 640, %s1235_s22 }
  0x57   : > { %1153 = vsyncadd (%p1460_p1), [#allocation6], 4294964224  ;;  %723 = vst [vmem:[%s1367_s26] sm:$0xff] %v1180_v0  ;;  %v1021_v2 = vld [vmem:[#allocation5] sm:$0xff]   ;;  %892 = vmatprep.subr.bf16.mxu0 %v1020_v1  ;;  %v1023_v4 = vld [vmem:[#allocation5 + $0x8] sm:$0xff]   ;;  %vm462_vm3 = vsmask.f32 4352 }
  0x58   : > { %724 = vst [vmem:[%s1367_s26 + $0x20] sm:$0xff] %v1180_v0  ;;  %912 = vmatprep.subr.bf16.mxu1 %v1021_v2  ;;  %893 = vmatpush3.bf16.msra.mxu0 %v1020_v1  ;;  %v1025_v6 = vld [vmem:[#allocation5 + $0x10] sm:$0xff]   ;;  %v1026_v7 = vld [vmem:[#allocation5 + $0x58] sm:$0xff]   ;;  %v1028_v9 = vld [vmem:[#allocation5 + $0x60] sm:$0xff]   ;;  %vm596_vm4 = vsmask.f32 7424  ;;  %s1393_s17 = scalar_lea.hbm %s1446_s5, %s955_s12 }
  0x59   : > { %913 = vmatpush3.bf16.msra.mxu1 %v1021_v2  ;;  %894 = vmatprep.subr.bf16.mxu0 %v1022_v3  ;;  %v1027_v8 = vld [vmem:[#allocation5 + $0x18] sm:$0xff]   ;;  %v1029_v10 = vld [vmem:[#allocation5 + $0x20] sm:$0xff]   ;;  %v1030_v11 = vld [vmem:[#allocation5 + $0x68] sm:$0xff]   ;;  %s742_s13 = sshll.u32 %s1367_s26, 4  ;;  %s729_s22 = scalar_lea.sflag [#allocation4], %s1353_s23  ;;  %s1396_s13 = int_to_ptr.vmem [resolvable:$true] %s742_s13 }
  0x5a   : > { %914 = vmatprep.subr.bf16.mxu1 %v1023_v4  ;;  %v1031_v12 = vld [vmem:[#allocation5 + $0x28] sm:$0xff]   ;;  %v260_v13 = vld [vmem:[%s1357_s29 + $0x8] sm:$0xff]  ;;  %v832_v16 = vld [vmem:[%s1442_s1] ss:$0 sm:$0xff]  ;;  %s1102_s27 = scalar_lea.vmem %s1396_s13, 640  ;;  %s1181_s11 = smov [#allocation7]  }
  0x5b   : > { %v261_v14 = vld [vmem:[%s1357_s29 + $0x10] sm:$0xff]  ;;  %v262_v15 = vld [vmem:[%s1357_s29 + $0x18] sm:$0xff]  ;;  %v272_v18 = vmul.f32 %v832_v16, %v260_v13  ;;  %v1034_v29 = vld [vmem:[#allocation5 + $0x78] sm:$0xff]   ;;  %p1103_p4 = scmp.ne.s32.totalorder %s1396_s13, %s1102_s27  ;;  %s1106_s29 = sshll.u32 %s1181_s11, 4  ;;  %s1107_s29 = int_to_ptr.vmem [resolvable:$false] %s1106_s29 }
  0x5c   : > { %895 = vmatpush3.bf16.msra.mxu0 %v1022_v3  ;;  %v833_v17 = vld [vmem:[%s1443_s2] ss:$0 sm:$0xff]  ;;  %v273_v19 = vmul.f32 %v832_v16, %v261_v14  ;;  %v274_v20 = vmul.f32 %v832_v16, %v262_v15  ;;  %v1035_v31 = vld [vmem:[#allocation5 + $0x38] sm:$0xff]   ;;  %v1036_v43 = vld [vmem:[#allocation5 + $0x80] sm:$0xff]   ;;  %s1108_s24 = scalar_lea.vmem %s1107_s29, 1280  ;;  %p1109_p10 = scmp.lt.s32.totalorder %s1396_s13, %s1107_s29 }
  0x5d   : > { %915 = vmatpush3.bf16.msra.mxu1 %v1023_v4  ;;  %896 = vmatprep.subr.bf16.mxu0 %v1024_v5  ;;  %v1032_v21 = vld [vmem:[#allocation5 + $0x70] sm:$0xff]   ;;  %v284_v22 = vadd.f32 %v833_v17, %v272_v18  ;;  %v1037_v55 = vld [vmem:[#allocation5 + $0x88] sm:$0xff]   ;;  %v1039_v60 = vld [vmem:[#allocation5 + $0x98] sm:$0xff]   ;;  %p1104_p6 = pnand %p1103_p4, %p1305_p12  ;;  %p1110_p13 = scmp.lt.s32.totalorder %s1108_s24, %s1102_s27 }
  0x5e   : > { %916 = vmatprep.subr.bf16.mxu1 %v1025_v6  ;;  %v285_v23 = vadd.f32 %v833_v17, %v273_v19  ;;  %v286_v24 = vadd.f32 %v833_v17, %v274_v20  ;;  %v1033_v25 = vld [vmem:[#allocation5 + $0x30] sm:$0xff]   ;;  %v1040_v61 = vld [vmem:[#allocation5 + $0xa0] sm:$0xff]   ;;  %v1041_v62 = vld [vmem:[#allocation5 + $0xa8] sm:$0xff]  }
  0x5f   : > { %vm289_vm0 = vcmp.ge.f32.partialorder %v284_v22, 0.0  ;;  %v294_v26 = vmul.f32 0.2, %v284_v22  ;;  %v1038_v59 = vld [vmem:[#allocation5 + $0x90] sm:$0xff]   ;;  %p1105_p8 = pneg %p1104_p6  ;;  %p1111_p3 = por %p1110_p13, %p1109_p10 }
  0x60   : > { %897 = vmatpush3.bf16.msra.mxu0 %v1024_v5  ;;  %vm290_vm1 = vcmp.ge.f32.partialorder %v285_v23, 0.0  ;;  %vm291_vm2 = vcmp.ge.f32.partialorder %v286_v24, 0.0  ;;  %v295_v27 = vmul.f32 0.2, %v285_v23  ;;  %v296_v28 = vmul.f32 0.2, %v286_v24 }
  0x61   : > { %917 = vmatpush3.bf16.msra.mxu1 %v1025_v6  ;;  %898 = vmatprep.subr.bf16.mxu0 %v1026_v7  ;;  %v299_v30 = vsel %vm289_vm0, %v284_v22, %v294_v26  ;;  %v1042_v63 = vld [vmem:[#allocation5 + $0xb0] sm:$0xff]   ;;  %p1112_p7 = pnand %p1111_p3, %p1105_p8 }
  0x62   : > { %918 = vmatprep.subr.bf16.mxu1 %v1027_v8  ;;  %v300_v32 = vsel %vm290_vm1, %v285_v23, %v295_v27  ;;  %v301_v33 = vsel %vm291_vm2, %v286_v24, %v296_v28  ;;  %v329_v34 = vpack.c.bf16 %v299_v30, %v1180_v0  ;;  %v858_v15 = vld [vmem:[%s1445_s4] ss:$0 sm:$0xff] }
  0x63   : > { %v330_v35 = vpack.c.bf16 %v301_v33, %v300_v32  ;;  %v347_v36 = vpack.c.bf16 %v300_v32, %v299_v30  ;;  %v578_v37 = vpack.c.bf16 %v1180_v0, %v301_v33  ;;  %v348_v50 = vpack.c.bf16 %v301_v33, %v301_v33  ;;  %v1043_v0 = vld [vmem:[#allocation5 + $0xb8] sm:$0xff]  }
  0x64   : > { %899 = vmatpush3.bf16.msra.mxu0 %v1026_v7  ;;  %v464_v38 = vshrl.u32 %v329_v34, 16  ;;  %v467_v39 = vshll.u32 %v329_v34, 16 }
  0x65   : > { %919 = vmatpush3.bf16.msra.mxu1 %v1027_v8  ;;  %900 = vmatprep.subr.bf16.mxu0 %v1028_v9  ;;  %v600_v40 = vshll.u32 %v347_v36, 16  ;;  %v472_v41 = vshrl.u32 %v330_v35, 16  ;;  %v475_v42 = vshll.u32 %v330_v35, 16  ;;  %v598_v44 = vshrl.u32 %v347_v36, 16 }
  0x66   : > { %920 = vmatprep.subr.bf16.mxu1 %v1029_v10  ;;  %908 = vmatprep.mubr.bf16.mxu0 %v347_v36  ;;  %v466_v45 = vrot.slane %v464_v38, 3  ;;  %v469_v46 = vrot.slane %v467_v39, 4  ;;  %v605_v47 = vshll.u32 %v578_v37, 16  ;;  %v609_v1 = vshrl.u32 %v578_v37, 16 }
  0x67   : > { %v474_v48 = vrot.slane %v472_v41, 3  ;;  %v477_v49 = vrot.slane %v475_v42, 4  ;;  %v602_v51 = vrot.slane %v600_v40, 1 }
  0x68   : > { %901 = vmatpush3.bf16.msra.mxu0 %v1028_v9  ;;  %v470_v52 = vor.u32 %v469_v46, %v466_v45  ;;  %v607_v53 = vrot.slane %v605_v47, 1 }
  0x69   : > { %921 = vmatpush3.bf16.msra.mxu1 %v1029_v10  ;;  %902 = vmatprep.subr.bf16.mxu0 %v1030_v11  ;;  %v478_v54 = vor.u32 %v477_v49, %v474_v48  ;;  %v603_v56 = vor.u32 %v602_v51, %v598_v44 }
  0x6a   : > { %922 = vmatprep.subr.bf16.mxu1 %v1031_v12  ;;  %v611_v2 = vor.u32 %v609_v1, %v607_v53 }
  0x6b   : > { %v479_v57 = vsel %vm462_vm3, %v470_v52, %v478_v54  ;;  %v608_v58 = vsel %vm596_vm4, %v603_v56, %v607_v53 }
  0x6c   : > { %903 = vmatpush3.bf16.msra.mxu0 %v1030_v11  ;;  %928 = vmatprep.mubr.bf16.mxu1 %v479_v57 }
  0x6d   : > { %923 = vmatpush3.bf16.msra.mxu1 %v1031_v12  ;;  %904 = vmatprep.subr.bf16.mxu0 %v1032_v21 }
  0x6e   : > { %924 = vmatprep.subr.bf16.mxu1 %v1033_v25 }
  0x70   : > { %905 = vmatpush3.bf16.msra.mxu0 %v1032_v21 }
  0x71   : > { %925 = vmatpush3.bf16.msra.mxu1 %v1033_v25  ;;  %906 = vmatprep.subr.bf16.mxu0 %v1034_v29 }
  0x72   : > { %926 = vmatprep.subr.bf16.mxu1 %v1035_v31 }
  0x74   : > { %907 = vmatpush3.bf16.msra.mxu0 %v1034_v29 }
  0x75   : > { %927 = vmatpush3.bf16.msra.mxu1 %v1035_v31  ;;  %932 = vmatprep.subr.bf16.mxu0 %v1036_v43 }
  0x77   : > { %909 = vmatmul.mubr.bf16.vlgmr.msra.gmra.mrb[0].mxu0 %v348_v50 }
  0x78   : > { %933 = vmatpush3.bf16.msra.mxu0 %v1036_v43  ;;  %929 = vmatmul.mubr.bf16.vlgmr.msra.gmra.mrb[0].mxu1 %v478_v54 }
  0x79   : > { %934 = vmatprep.subr.bf16.mxu0 %v1037_v55  ;;  %948 = vmatprep.mubr.bf16.mxu0 %v608_v58 }
  0x7c   : > { %935 = vmatpush3.bf16.msra.mxu0 %v1037_v55 }
  0x7d   : > { %936 = vmatprep.subr.bf16.mxu0 %v1038_v59 }
  0x80   : > { %937 = vmatpush3.bf16.msra.mxu0 %v1038_v59 }
  0x81   : > { %938 = vmatprep.subr.bf16.mxu0 %v1039_v60 }
  0x84   : > { %939 = vmatpush3.bf16.msra.mxu0 %v1039_v60 }
  0x85   : > { %940 = vmatprep.subr.bf16.mxu0 %v1040_v61 }
  0x88   : > { %941 = vmatpush3.bf16.msra.mxu0 %v1040_v61 }
  0x89   : > { %942 = vmatprep.subr.bf16.mxu0 %v1041_v62 }
  0x8c   : > { %943 = vmatpush3.bf16.msra.mxu0 %v1041_v62 }
  0x8d   : > { %944 = vmatprep.subr.bf16.mxu0 %v1042_v63 }
  0x90   : > { %945 = vmatpush3.bf16.msra.mxu0 %v1042_v63 }
  0x91   : > { %946 = vmatprep.subr.bf16.mxu0 %v1043_v0 }
  0x94   : > { %947 = vmatpush3.bf16.msra.mxu0 %v1043_v0 }
  0x97   : > { %949 = vmatmul.mubr.bf16.vlgmr.msra.gmra.mrb[4].mxu0 %v611_v2 }
 0x14a   : > { %v910_v3 = vpop.f32.mrb[0].mxu0 }
 0x14b   : > { %v448_v4 = vpop.f32.mrb[1].mxu0  ;;  %v930_v5 = vpop.f32.mrb[0].mxu1 }
 0x14c   : > { %v911_v6 = vpop.f32.mrb[2].mxu0  ;;  %v573_v7 = vadd.f32 %v930_v5, %v910_v3  ;;  %v564_v8 = vpop.f32.mrb[1].mxu1 }
 0x14d   : > { %v451_v9 = vpop.f32.mrb[3].mxu0  ;;  %v565_v10 = vadd.f32 %v564_v8, %v448_v4  ;;  %v931_v11 = vpop.f32.mrb[2].mxu1 }
 0x14e   : > { %v567_v12 = vpop.f32.mrb[3].mxu1 }
 0x14f   : > { %v568_v13 = vadd.f32 %v567_v12, %v451_v9 }
 0x16a   : > { %v950_v14 = vpop.f32.mrb[4].mxu0 }
 0x16b   : > { %v712_v16 = vadd.f32 %v950_v14, %v573_v7  ;;  %v696_v17 = vpop.f32.mrb[5].mxu0 }
 0x16c   : > { %v710_v18 = vadd.f32 %v696_v17, %v565_v10  ;;  %v951_v19 = vpop.f32.mrb[6].mxu0 }
 0x16d   : > { %v722_v20 = vadd.f32 %v858_v15, %v712_v16  ;;  %v699_v21 = vpop.f32.mrb[7].mxu0 }
 0x16e   : > { %v720_v22 = vadd.f32 %v858_v15, %v710_v18  ;;  %v711_v23 = vadd.f32 %v699_v21, %v568_v13 }
 0x16f   : > { %727 = vst [vmem:[%s1367_s26 + $0x18] sm:$0xff] %v722_v20 }
 0x170   : > { %725 = vst [vmem:[%s1367_s26 + $0x8] sm:$0xff] %v720_v22  ;;  %v721_v24 = vadd.f32 %v858_v15, %v711_v23 }
 0x172   : > { %726 = vst [vmem:[%s1367_s26 + $0x10] sm:$0xff] %v721_v24 }
 0x173   : > { %1115 = shalt.err (!%p1112_p7)
}
 0x174   : > { %s1116_s26 = scalar_lea.hbm %s1393_s17, 640  ;;  %s1120_s7 = scalar_lea.hbm %s1446_s5, 1280 }
 0x175   : > { %p1117_p9 = scmp.ne.s32.totalorder %s1393_s17, %s1116_s26  ;;  %p1121_p5 = scmp.lt.u32.totalorder %s1393_s17, %s1446_s5 }
 0x176   : > { %p1122_p11 = scmp.lt.u32.totalorder %s1120_s7, %s1116_s26  ;;  %p1124_p4 = scmp.lt.u32.totalorder %s1116_s26, %s1393_s17 }
 0x177   : > { %p1118_p2 = pnand %p1117_p9, %p1305_p12 }
 0x178   : > { %p1123_p1 = por %p1122_p11, %p1121_p5 }
 0x179   : > { %p1119_p0 = pneg %p1118_p2 }
 0x17a   : > { %p1125_p6 = por %p1124_p4, %p1123_p1 }
 0x17c   : > { %p1126_p8 = pnand %p1125_p6, %p1119_p0 }
 0x17e   : > { %1129 = shalt.err (!%p1126_p8)
}
 0x17f   : > { %s1182_s12 = smov 128   ;;  %s1183_s6 = smov 8  }
 0x180   : > { %962 = dma.vmem_to_hbm [thread:$0]  (%p1305_p12), %s1396_s13, 640, %s1393_s17, %s729_s22, %s1182_s12, %s1182_s12, %s1183_s6  }
 0x181 PF: > { %s757_s16 = sand.u32 1, %s1160_s18   ;;  %p1461_p10 = scmp.ne.s32.totalorder %s1451_s25, 0 }
 0x182   : > { %p1462_p13 = scmp.ge.s32.totalorder %s1172_s21, 2  ;;  %s758_s27 = scalar_lea.sflag [#allocation4], %s757_s16 }
 0x184   : > { %p973_p3 = pnand %p1462_p13, %p1461_p10 }
 0x186   : > { %1155 = dma.done.wait (!%p973_p3), %s758_s27, 640  }
 0x187   : > { %1157 = vsyncadd (!%p973_p3), %s758_s27, 4294966656  ;;  %p19_p7 = scmp.ge.s32.totalorder %s1270_s30, 4   ;;  %s1463_s18 = smov %s1164_s19 }
 0x188   : > { %s1464_s19 = smov %s1168_s20  ;;  %s1465_s20 = smov %s1301_s8 }
 0x189   : > { %s1466_s21 = smov %s1270_s30  ;;  %21 = sbr.rel (!%p19_p7) target bundleno = 6 (0x6), region = 91 }
 0x190   :  { %763 = vsyncpa [#allocation3], 1 }
 0x191   :  { %765 = vsyncpa [#allocation3 + $0x1], 1 }
 0x192   :  { %766 = vsyncpa [#allocation6], 1 }
 0x193   :  { %767 = vsyncpa [#allocation4], 1 }
 0x194   :  { %769 = vsyncpa [#allocation4 + $0x1], 1 }

</bundles_post_ra>
